<compile_context>
chip_gen: v6e
topology: v6e:2x2x1
jax: 0.10.0
libtpu: 0.0.40
codegen_flags: <defaults>
</compile_context>

<pallas_src>
import jax
import jax.numpy as jnp
import numpy as np
from jax.experimental import pallas as pl
from jax.experimental.pallas import tpu as pltpu


def up1d_kernel(x1_ref, x2_ref, wt_ref, ub_ref, w1_ref, b1_ref, w2_ref, b2_ref,
                o_ref):
    # x1_ref: (1, C1, L1)        decoder input (to be upsampled)
    # x2_ref: (1, C2, L2)        skip connection
    # wt_ref: (2, C2, C1)        ConvTranspose weights, tap-major, transposed
    # ub_ref: (C2, 1)            ConvTranspose bias
    # w1_ref: (C_mid, 6*C2)      conv1 fused-tap weights (BN1 scale folded in)
    # b1_ref: (C_mid, 1)         BN1 folded shift
    # w2_ref: (C_out, 3*C_mid)   conv2 fused-tap weights (BN2 scale folded in)
    # b2_ref: (C_out, 1)         BN2 folded shift
    # o_ref:  (1, C_out, L2)
    C1, L1 = x1_ref.shape[1], x1_ref.shape[2]
    C2, L2 = x2_ref.shape[1], x2_ref.shape[2]
    pad_l = (L2 - 2 * L1) // 2            # F.pad left amount (static)

    x1 = x1_ref[0]                        # (C1, L1)
    x2 = x2_ref[0]                        # (C2, L2)

    # ---- ConvTranspose1d(k=2, s=2): even/odd taps, then lane expansion on MXU.
    ev = jnp.dot(wt_ref[0], x1, preferred_element_type=jnp.float32)   # (C2, L1)
    od = jnp.dot(wt_ref[1], x1, preferred_element_type=jnp.float32)   # (C2, L1)

    row = jax.lax.broadcasted_iota(jnp.int32, (L1, L2), 0)
    col = jax.lax.broadcasted_iota(jnp.int32, (L1, L2), 1)
    e_even = (col == 2 * row + pad_l).astype(jnp.float32)             # (L1, L2)
    e_odd = (col == 2 * row + 1 + pad_l).astype(jnp.float32)          # (L1, L2)
    up = (jnp.dot(ev, e_even, preferred_element_type=jnp.float32)
          + jnp.dot(od, e_odd, preferred_element_type=jnp.float32))   # (C2, L2)
    if pad_l == 0 and L2 == 2 * L1:
        up = up + ub_ref[...]
    else:
        # bias only inside the valid (non-zero-padded) window of F.pad
        lane = jax.lax.broadcasted_iota(jnp.int32, (C2, L2), 1)
        valid = (lane >= pad_l) & (lane < pad_l + 2 * L1)
        up = up + jnp.where(valid, ub_ref[...], 0.0)

    # ---- channel concat [x2 ; upsampled x1]  (torch.cat order), kept in registers
    cat = jnp.concatenate([x2, up], axis=0)                           # (2*C2, L2)

    def tap_operand(z):
        # rows = [tap0: z[l-1] (reflect), tap1: z[l], tap2: z[l+1] (reflect)]
        L = z.shape[-1]
        left = jnp.concatenate([z[:, 1:2], z[:, :L - 1]], axis=1)
        right = jnp.concatenate([z[:, 1:], z[:, L - 2:L - 1]], axis=1)
        return jnp.concatenate([left, z, right], axis=0)

    # ---- conv1 (3 taps fused into one dot, BN1 scale folded in) + shift + ReLU
    h = jnp.dot(w1_ref[...], tap_operand(cat),
                preferred_element_type=jnp.float32)                   # (C_mid, L2)
    h = jnp.maximum(h + b1_ref[...], 0.0)
    # Dropout(0.2): identity in eval.
    # TODO(synk): training-mode dropout (random masking + 1/(1-p) scaling) not implemented.

    # ---- conv2 (fused taps, BN2 scale folded) + shift + ReLU
    y = jnp.dot(w2_ref[...], tap_operand(h),
                preferred_element_type=jnp.float32)                   # (C_out, L2)
    y = jnp.maximum(y + b2_ref[...], 0.0)

    o_ref[0] = y.astype(o_ref.dtype)


def up_1d(x1, x2, wt, ub, w1f, b1, w2f, b2):
    """x1: (N, C1, L1), x2: (N, C2, L2). Returns (N, C_out, L2)."""
    N, C1, L1 = x1.shape
    N2, C2, L2 = x2.shape
    assert N == N2
    assert L1 >= 1 and L2 >= 2 and L2 >= 2 * L1, "need L2 >= 2*L1 >= 2"
    C_mid = w1f.shape[0]
    C_out = w2f.shape[0]
    assert w1f.shape[1] == 6 * C2 and w2f.shape[1] == 3 * C_mid

    grid_spec = pltpu.PrefetchScalarGridSpec(
        num_scalar_prefetch=0,
        grid=(N,),
        in_specs=[
            pl.BlockSpec((1, C1, L1), lambda n: (n, 0, 0)),
            pl.BlockSpec((1, C2, L2), lambda n: (n, 0, 0)),
            pl.BlockSpec((2, C2, C1), lambda n: (0, 0, 0)),
            pl.BlockSpec((C2, 1), lambda n: (0, 0)),
            pl.BlockSpec((C_mid, 6 * C2), lambda n: (0, 0)),
            pl.BlockSpec((C_mid, 1), lambda n: (0, 0)),
            pl.BlockSpec((C_out, 3 * C_mid), lambda n: (0, 0)),
            pl.BlockSpec((C_out, 1), lambda n: (0, 0)),
        ],
        out_specs=pl.BlockSpec((1, C_out, L2), lambda n: (n, 0, 0)),
    )
    return pl.pallas_call(
        up1d_kernel,
        out_shape=jax.ShapeDtypeStruct((N, C_out, L2), jnp.float32),
        grid_spec=grid_spec,
        compiler_params=pltpu.CompilerParams(dimension_semantics=("parallel",)),
    )(x1, x2, wt, ub, w1f, b1, w2f, b2)


def prepare_params(wt_pt, ub, w1_pt, s1, sh1, w2_pt, s2, sh2):
    """Host-side weight prep (tap fusion + BN-scale folding).

    wt_pt: (C1, C2, 2)   ConvTranspose1d weight (PyTorch layout), ub: (C2,)
    w1_pt: (C_mid, 2*C2, 3), w2_pt: (C_out, C_mid, 3) conv weights (PyTorch layout)
    s*, sh*: folded BatchNorm scale / shift vectors.
    """
    wt = jnp.stack([wt_pt[:, :, 0].T, wt_pt[:, :, 1].T], axis=0)         # (2, C2, C1)
    w1f = jnp.concatenate([w1_pt[:, :, t] for t in range(3)], axis=1) * s1[:, None]
    w2f = jnp.concatenate([w2_pt[:, :, t] for t in range(3)], axis=1) * s2[:, None]
    return (wt.astype(jnp.float32), ub[:, None].astype(jnp.float32),
            w1f.astype(jnp.float32), sh1[:, None].astype(jnp.float32),
            w2f.astype(jnp.float32), sh2[:, None].astype(jnp.float32))


def _reference(x1, x2, wt_pt, ub, w1_pt, s1, sh1, w2_pt, s2, sh2):
    """Pure-JAX reference of Up_1D.forward (eval mode)."""
    HI = jax.lax.Precision.HIGHEST
    N, C1, L1 = x1.shape
    _, C2, L2 = x2.shape
    ev = jnp.einsum("ncl,co->nol", x1, wt_pt[:, :, 0], precision=HI)
    od = jnp.einsum("ncl,co->nol", x1, wt_pt[:, :, 1], precision=HI)
    up = jnp.stack([ev, od], axis=-1).reshape(N, C2, 2 * L1) + ub[None, :, None]
    diff = L2 - 2 * L1
    up = jnp.pad(up, ((0, 0), (0, 0), (diff // 2, diff - diff // 2)))
    xcat = jnp.concatenate([x2, up], axis=1)

    def conv_reflect(z, w):
        zp = jnp.pad(z, ((0, 0), (0, 0), (1, 1)), mode="reflect")
        L = z.shape[-1]
        out = 0.0
        for t in range(3):
            out = out + jnp.einsum("oc,ncl->nol", w[:, :, t], zp[:, :, t:t + L],
                                   precision=HI)
        return out

    h = jnp.maximum(conv_reflect(xcat, w1_pt) * s1[None, :, None]
                    + sh1[None, :, None], 0.0)
    y = jnp.maximum(conv_reflect(h, w2_pt) * s2[None, :, None]
                    + sh2[None, :, None], 0.0)
    return y


if __name__ == "__main__":
    key = jax.random.PRNGKey(0)
    N = 2
    C_in = 8        # Up_1D in_channels  (x1 channels)
    C_out = 4       # Up_1D out_channels (x2 channels and output channels)
    L1 = 8          # x1 length (upsampled to 2*L1)
    C_mid = C_out
    C_cat = 2 * C_out

    keys = jax.random.split(key, 16)
    x1 = jax.random.normal(keys[0], (N, C_in, L1), jnp.float32)

    # ConvTranspose1d params (PyTorch layout: (C_in, C_out, 2), bias (C_out,))
    wt_pt = jax.random.normal(keys[1], (C_in, C_out, 2), jnp.float32) * 0.3
    ub = 0.1 * jax.random.normal(keys[2], (C_out,), jnp.float32)

    # DoubleConv conv weights (PyTorch layout, bias=False)
    w1_pt = jax.random.normal(keys[3], (C_mid, C_cat, 3), jnp.float32) * 0.3
    w2_pt = jax.random.normal(keys[4], (C_out, C_mid, 3), jnp.float32) * 0.3

    # BatchNorm params (eval mode -> running stats)
    g1 = 1.0 + 0.1 * jax.random.normal(keys[5], (C_mid,), jnp.float32)
    be1 = 0.1 * jax.random.normal(keys[6], (C_mid,), jnp.float32)
    rm1 = 0.1 * jax.random.normal(keys[7], (C_mid,), jnp.float32)
    rv1 = 1.0 + 0.1 * jnp.abs(jax.random.normal(keys[8], (C_mid,), jnp.float32))
    g2 = 1.0 + 0.1 * jax.random.normal(keys[9], (C_out,), jnp.float32)
    be2 = 0.1 * jax.random.normal(keys[10], (C_out,), jnp.float32)
    rm2 = 0.1 * jax.random.normal(keys[11], (C_out,), jnp.float32)
    rv2 = 1.0 + 0.1 * jnp.abs(jax.random.normal(keys[12], (C_out,), jnp.float32))

    eps = 1e-5
    s1 = g1 / jnp.sqrt(rv1 + eps)
    sh1 = be1 - rm1 * s1
    s2 = g2 / jnp.sqrt(rv2 + eps)
    sh2 = be2 - rm2 * s2

    wt, ubc, w1f, b1c, w2f, b2c = prepare_params(wt_pt, ub, w1_pt, s1, sh1,
                                                 w2_pt, s2, sh2)

    # L2 = 16 -> diffY = 0; L2 = 17 -> diffY = 1 (exercises the F.pad branch)
    for i, L2 in enumerate((16, 17)):
        x2 = jax.random.normal(keys[13 + i], (N, C_out, L2), jnp.float32)
        out = jax.block_until_ready(up_1d(x1, x2, wt, ubc, w1f, b1c, w2f, b2c))
        ref = _reference(x1, x2, wt_pt, ub, w1_pt, s1, sh1, w2_pt, s2, sh2)
        np.testing.assert_allclose(np.asarray(out), np.asarray(ref),
                                   rtol=1e-4, atol=1e-4)

    print("KERNEL_OK")
</pallas_src>

<mosaic_0001>
module attributes {stable_mosaic.version = 11 : i64} {
  func.func @up1d_kernel(%arg0: i32, %arg1: memref<1x8x8xf32, #tpu.memory_space<vmem>>, %arg2: memref<1x4x16xf32, #tpu.memory_space<vmem>>, %arg3: memref<2x4x8xf32, #tpu.memory_space<vmem>>, %arg4: memref<4x1xf32, #tpu.memory_space<vmem>>, %arg5: memref<4x24xf32, #tpu.memory_space<vmem>>, %arg6: memref<4x1xf32, #tpu.memory_space<vmem>>, %arg7: memref<4x12xf32, #tpu.memory_space<vmem>>, %arg8: memref<4x1xf32, #tpu.memory_space<vmem>>, %arg9: memref<1x4x16xf32, #tpu.memory_space<vmem>>) attributes {dimension_semantics = [#tpu.dimension_semantics<parallel>], iteration_bounds = array<i64: 2>, scalar_prefetch = 0 : i64, scratch_operands = 0 : i64, tpu.core_type = #tpu.core_type<tc>, window_params = [{transform_indices = @transform_0, window_bounds = array<i64: 1, 8, 8>}, {transform_indices = @transform_1, window_bounds = array<i64: 1, 4, 16>}, {pipeline_mode = #tpu.pipeline_mode<synchronous>, transform_indices = @transform_2, window_bounds = array<i64: 2, 4, 8>}, {pipeline_mode = #tpu.pipeline_mode<synchronous>, transform_indices = @transform_3, window_bounds = array<i64: 4, 1>}, {pipeline_mode = #tpu.pipeline_mode<synchronous>, transform_indices = @transform_4, window_bounds = array<i64: 4, 24>}, {pipeline_mode = #tpu.pipeline_mode<synchronous>, transform_indices = @transform_5, window_bounds = array<i64: 4, 1>}, {pipeline_mode = #tpu.pipeline_mode<synchronous>, transform_indices = @transform_6, window_bounds = array<i64: 4, 12>}, {pipeline_mode = #tpu.pipeline_mode<synchronous>, transform_indices = @transform_7, window_bounds = array<i64: 4, 1>}, {transform_indices = @transform_8, window_bounds = array<i64: 1, 4, 16>}]} {
    %c0 = arith.constant 0 : index
    %c0_0 = arith.constant 0 : index
    %c0_1 = arith.constant 0 : index
    %0 = vector.load %arg1[%c0, %c0_0, %c0_1] : memref<1x8x8xf32, #tpu.memory_space<vmem>>, vector<1x8x8xf32>
    %1 = vector.shape_cast %0 : vector<1x8x8xf32> to vector<8x8xf32>
    %c0_2 = arith.constant 0 : index
    %c0_3 = arith.constant 0 : index
    %c0_4 = arith.constant 0 : index
    %2 = vector.load %arg2[%c0_2, %c0_3, %c0_4] : memref<1x4x16xf32, #tpu.memory_space<vmem>>, vector<1x4x16xf32>
    %3 = vector.shape_cast %2 : vector<1x4x16xf32> to vector<4x16xf32>
    %c0_5 = arith.constant 0 : index
    %c0_6 = arith.constant 0 : index
    %c0_7 = arith.constant 0 : index
    %4 = vector.load %arg3[%c0_5, %c0_6, %c0_7] : memref<2x4x8xf32, #tpu.memory_space<vmem>>, vector<1x4x8xf32>
    %5 = vector.shape_cast %4 : vector<1x4x8xf32> to vector<4x8xf32>
    %cst = arith.constant dense<0.000000e+00> : vector<4x8xf32>
    %6 = tpu.matmul %5, %1, %cst {dimension_numbers = #tpu.dot_dimension_numbers<[1], [0], [0], [1], [0, 0, 1, 1], [], []>} : vector<4x8xf32>, vector<8x8xf32>, vector<4x8xf32> -> vector<4x8xf32>
    %c1 = arith.constant 1 : index
    %c0_8 = arith.constant 0 : index
    %c0_9 = arith.constant 0 : index
    %7 = vector.load %arg3[%c1, %c0_8, %c0_9] : memref<2x4x8xf32, #tpu.memory_space<vmem>>, vector<1x4x8xf32>
    %8 = vector.shape_cast %7 : vector<1x4x8xf32> to vector<4x8xf32>
    %cst_10 = arith.constant dense<0.000000e+00> : vector<4x8xf32>
    %9 = tpu.matmul %8, %1, %cst_10 {dimension_numbers = #tpu.dot_dimension_numbers<[1], [0], [0], [1], [0, 0, 1, 1], [], []>} : vector<4x8xf32>, vector<8x8xf32>, vector<4x8xf32> -> vector<4x8xf32>
    %10 = tpu.iota {dimensions = array<i32: 0>} : vector<8x16xi32>
    %11 = tpu.iota {dimensions = array<i32: 1>} : vector<8x16xi32>
    %c2_i32 = arith.constant 2 : i32
    %12 = vector.broadcast %c2_i32 : i32 to vector<8x16xi32>
    %13 = arith.muli %12, %10 : vector<8x16xi32>
    %c0_i32 = arith.constant 0 : i32
    %14 = vector.broadcast %c0_i32 : i32 to vector<8x16xi32>
    %15 = arith.addi %13, %14 : vector<8x16xi32>
    %16 = arith.cmpi eq, %11, %15 : vector<8x16xi32>
    %17 = arith.extui %16 : vector<8x16xi1> to vector<8x16xi32>
    %18 = arith.sitofp %17 : vector<8x16xi32> to vector<8x16xf32>
    %c2_i32_11 = arith.constant 2 : i32
    %19 = vector.broadcast %c2_i32_11 : i32 to vector<8x16xi32>
    %20 = arith.muli %19, %10 : vector<8x16xi32>
    %c1_i32 = arith.constant 1 : i32
    %21 = vector.broadcast %c1_i32 : i32 to vector<8x16xi32>
    %22 = arith.addi %20, %21 : vector<8x16xi32>
    %c0_i32_12 = arith.constant 0 : i32
    %23 = vector.broadcast %c0_i32_12 : i32 to vector<8x16xi32>
    %24 = arith.addi %22, %23 : vector<8x16xi32>
    %25 = arith.cmpi eq, %11, %24 : vector<8x16xi32>
    %26 = arith.extui %25 : vector<8x16xi1> to vector<8x16xi32>
    %27 = arith.sitofp %26 : vector<8x16xi32> to vector<8x16xf32>
    %cst_13 = arith.constant dense<0.000000e+00> : vector<4x16xf32>
    %28 = tpu.matmul %6, %18, %cst_13 {dimension_numbers = #tpu.dot_dimension_numbers<[1], [0], [0], [1], [0, 0, 1, 1], [], []>} : vector<4x8xf32>, vector<8x16xf32>, vector<4x16xf32> -> vector<4x16xf32>
    %cst_14 = arith.constant dense<0.000000e+00> : vector<4x16xf32>
    %29 = tpu.matmul %9, %27, %cst_14 {dimension_numbers = #tpu.dot_dimension_numbers<[1], [0], [0], [1], [0, 0, 1, 1], [], []>} : vector<4x8xf32>, vector<8x16xf32>, vector<4x16xf32> -> vector<4x16xf32>
    %30 = arith.addf %28, %29 : vector<4x16xf32>
    %c0_15 = arith.constant 0 : index
    %c0_16 = arith.constant 0 : index
    %31 = vector.load %arg4[%c0_15, %c0_16] : memref<4x1xf32, #tpu.memory_space<vmem>>, vector<4x1xf32>
    %32 = vector.broadcast %31 : vector<4x1xf32> to vector<4x16xf32>
    %33 = arith.addf %30, %32 : vector<4x16xf32>
    %34 = tpu.concatenate %3, %33 in 0 : vector<4x16xf32>, vector<4x16xf32> -> vector<8x16xf32>
    %c0_17 = arith.constant 0 : index
    %c0_18 = arith.constant 0 : index
    %35 = vector.load %arg5[%c0_17, %c0_18] : memref<4x24xf32, #tpu.memory_space<vmem>>, vector<4x24xf32>
    %36 = vector.extract_strided_slice %34 {offsets = [0, 1], sizes = [8, 1], strides = [1, 1]} : vector<8x16xf32> to vector<8x1xf32>
    %37 = vector.extract_strided_slice %34 {offsets = [0, 0], sizes = [8, 15], strides = [1, 1]} : vector<8x16xf32> to vector<8x15xf32>
    %38 = tpu.concatenate %36, %37 in 1 : vector<8x1xf32>, vector<8x15xf32> -> vector<8x16xf32>
    %39 = vector.extract_strided_slice %34 {offsets = [0, 1], sizes = [8, 15], strides = [1, 1]} : vector<8x16xf32> to vector<8x15xf32>
    %40 = vector.extract_strided_slice %34 {offsets = [0, 14], sizes = [8, 1], strides = [1, 1]} : vector<8x16xf32> to vector<8x1xf32>
    %41 = tpu.concatenate %39, %40 in 1 : vector<8x15xf32>, vector<8x1xf32> -> vector<8x16xf32>
    %42 = tpu.concatenate %38, %34, %41 in 0 : vector<8x16xf32>, vector<8x16xf32>, vector<8x16xf32> -> vector<24x16xf32>
    %cst_19 = arith.constant dense<0.000000e+00> : vector<4x16xf32>
    %43 = tpu.matmul %35, %42, %cst_19 {dimension_numbers = #tpu.dot_dimension_numbers<[1], [0], [0], [1], [0, 0, 1, 1], [], []>} : vector<4x24xf32>, vector<24x16xf32>, vector<4x16xf32> -> vector<4x16xf32>
    %c0_20 = arith.constant 0 : index
    %c0_21 = arith.constant 0 : index
    %44 = vector.load %arg6[%c0_20, %c0_21] : memref<4x1xf32, #tpu.memory_space<vmem>>, vector<4x1xf32>
    %45 = vector.broadcast %44 : vector<4x1xf32> to vector<4x16xf32>
    %46 = arith.addf %43, %45 : vector<4x16xf32>
    %cst_22 = arith.constant 0.000000e+00 : f32
    %47 = vector.broadcast %cst_22 : f32 to vector<4x16xf32>
    %48 = arith.maximumf %46, %47 : vector<4x16xf32>
    %c0_23 = arith.constant 0 : index
    %c0_24 = arith.constant 0 : index
    %49 = vector.load %arg7[%c0_23, %c0_24] : memref<4x12xf32, #tpu.memory_space<vmem>>, vector<4x12xf32>
    %50 = vector.extract_strided_slice %48 {offsets = [0, 1], sizes = [4, 1], strides = [1, 1]} : vector<4x16xf32> to vector<4x1xf32>
    %51 = vector.extract_strided_slice %48 {offsets = [0, 0], sizes = [4, 15], strides = [1, 1]} : vector<4x16xf32> to vector<4x15xf32>
    %52 = tpu.concatenate %50, %51 in 1 : vector<4x1xf32>, vector<4x15xf32> -> vector<4x16xf32>
    %53 = vector.extract_strided_slice %48 {offsets = [0, 1], sizes = [4, 15], strides = [1, 1]} : vector<4x16xf32> to vector<4x15xf32>
    %54 = vector.extract_strided_slice %48 {offsets = [0, 14], sizes = [4, 1], strides = [1, 1]} : vector<4x16xf32> to vector<4x1xf32>
    %55 = tpu.concatenate %53, %54 in 1 : vector<4x15xf32>, vector<4x1xf32> -> vector<4x16xf32>
    %56 = tpu.concatenate %52, %48, %55 in 0 : vector<4x16xf32>, vector<4x16xf32>, vector<4x16xf32> -> vector<12x16xf32>
    %cst_25 = arith.constant dense<0.000000e+00> : vector<4x16xf32>
    %57 = tpu.matmul %49, %56, %cst_25 {dimension_numbers = #tpu.dot_dimension_numbers<[1], [0], [0], [1], [0, 0, 1, 1], [], []>} : vector<4x12xf32>, vector<12x16xf32>, vector<4x16xf32> -> vector<4x16xf32>
    %c0_26 = arith.constant 0 : index
    %c0_27 = arith.constant 0 : index
    %58 = vector.load %arg8[%c0_26, %c0_27] : memref<4x1xf32, #tpu.memory_space<vmem>>, vector<4x1xf32>
    %59 = vector.broadcast %58 : vector<4x1xf32> to vector<4x16xf32>
    %60 = arith.addf %57, %59 : vector<4x16xf32>
    %cst_28 = arith.constant 0.000000e+00 : f32
    %61 = vector.broadcast %cst_28 : f32 to vector<4x16xf32>
    %62 = arith.maximumf %60, %61 : vector<4x16xf32>
    %c0_29 = arith.constant 0 : index
    %c0_30 = arith.constant 0 : index
    %c0_31 = arith.constant 0 : index
    %63 = vector.load %arg9[%c0_29, %c0_30, %c0_31] : memref<1x4x16xf32, #tpu.memory_space<vmem>>, vector<1x4x16xf32>
    %64 = vector.shape_cast %63 : vector<1x4x16xf32> to vector<4x16xf32>
    %65 = vector.shape_cast %62 : vector<4x16xf32> to vector<1x4x16xf32>
    tpu.vector_store %arg9[%c0_29, %c0_30, %c0_31], %65 {strides = array<i32>} : memref<1x4x16xf32, #tpu.memory_space<vmem>>, vector<1x4x16xf32>,
    return
  }
  func.func @transform_0(%arg0: i32) -> (i32, i32, i32) {
    %c0_i32 = arith.constant 0 : i32
    %c0_i32_0 = arith.constant 0 : i32
    %c0_i32_1 = arith.constant 0 : i32
    return %arg0, %c0_i32, %c0_i32_0 : i32, i32, i32
  }
  func.func @transform_1(%arg0: i32) -> (i32, i32, i32) {
    %c0_i32 = arith.constant 0 : i32
    %c0_i32_0 = arith.constant 0 : i32
    %c0_i32_1 = arith.constant 0 : i32
    return %arg0, %c0_i32, %c0_i32_0 : i32, i32, i32
  }
  func.func @transform_2(%arg0: i32) -> (i32, i32, i32) {
    %c0_i32 = arith.constant 0 : i32
    %c0_i32_0 = arith.constant 0 : i32
    %c0_i32_1 = arith.constant 0 : i32
    %c0_i32_2 = arith.constant 0 : i32
    return %c0_i32, %c0_i32_0, %c0_i32_1 : i32, i32, i32
  }
  func.func @transform_3(%arg0: i32) -> (i32, i32) {
    %c0_i32 = arith.constant 0 : i32
    %c0_i32_0 = arith.constant 0 : i32
    %c0_i32_1 = arith.constant 0 : i32
    return %c0_i32, %c0_i32_0 : i32, i32
  }
  func.func @transform_4(%arg0: i32) -> (i32, i32) {
    %c0_i32 = arith.constant 0 : i32
    %c0_i32_0 = arith.constant 0 : i32
    %c0_i32_1 = arith.constant 0 : i32
    return %c0_i32, %c0_i32_0 : i32, i32
  }
  func.func @transform_5(%arg0: i32) -> (i32, i32) {
    %c0_i32 = arith.constant 0 : i32
    %c0_i32_0 = arith.constant 0 : i32
    %c0_i32_1 = arith.constant 0 : i32
    return %c0_i32, %c0_i32_0 : i32, i32
  }
  func.func @transform_6(%arg0: i32) -> (i32, i32) {
    %c0_i32 = arith.constant 0 : i32
    %c0_i32_0 = arith.constant 0 : i32
    %c0_i32_1 = arith.constant 0 : i32
    return %c0_i32, %c0_i32_0 : i32, i32
  }
  func.func @transform_7(%arg0: i32) -> (i32, i32) {
    %c0_i32 = arith.constant 0 : i32
    %c0_i32_0 = arith.constant 0 : i32
    %c0_i32_1 = arith.constant 0 : i32
    return %c0_i32, %c0_i32_0 : i32, i32
  }
  func.func @transform_8(%arg0: i32) -> (i32, i32, i32) {
    %c0_i32 = arith.constant 0 : i32
    %c0_i32_0 = arith.constant 0 : i32
    %c0_i32_1 = arith.constant 0 : i32
    return %arg0, %c0_i32, %c0_i32_0 : i32, i32, i32
  }
}

</mosaic_0001>

<bundles_post_ra>
// kernel: tpu_custom_call.1
= control target key start
LH: loop header
LB: loop body
LE: loop exit
PB: predicated region body
PF: predicated region fallthrough
CT: control target
= control target key end

     0   :  { %13 = vsyncpa [#allocation3], 0  ;;  %s1425_s0 = inlined_call_operand.hbm [shape: f32[2,8,8], index: 0, kind: input, shape index: {}]   ;;  %s1426_s1 = inlined_call_operand.vmem [shape: f32[2,4,16], index: 1, kind: input, shape index: {}]   ;;  %s1427_s2 = inlined_call_operand.vmem [shape: f32[2,4,8], index: 2, kind: input, shape index: {}]   ;;  %s1428_s3 = inlined_call_operand.vmem [shape: f32[4,1], index: 3, kind: input, shape index: {}]   ;;  %s1429_s4 = inlined_call_operand.vmem [shape: f32[4,24], index: 4, kind: input, shape index: {}]   ;;  %s1430_s5 = inlined_call_operand.vmem [shape: f32[4,1], index: 5, kind: input, shape index: {}]   ;;  %s1431_s6 = inlined_call_operand.vmem [shape: f32[4,12], index: 6, kind: input, shape index: {}]   ;;  %s1432_s7 = inlined_call_operand.vmem [shape: f32[4,1], index: 7, kind: input, shape index: {}]   ;;  %s1433_s8 = inlined_call_operand.hbm [shape: f32[2,4,16], index: 8, kind: output, shape index: {}]  }
   0x1   :  { %15 = vsyncpa [#allocation3 + $0x1], 0 }
   0x2   :  { %16 = vsyncpa [#allocation4], 0 }
   0x3   :  { %18 = vsyncpa [#allocation4 + $0x1], 0  ;;  %s1225_s27 = smov 0   ;;  %s1227_s28 = smov 0  }
   0x4   :  { %s1229_s29 = smov 0   ;;  %s1231_s30 = smov 0  }
   0x5 LB: > { %s1246_s9 = sadd.s32 4294967295, %s1170_s30   ;;  %s948_s10 = sadd.s32 4294967294, %s1170_s30   ;;  %s1170_s30 = sphi %s1231_s30, %s1452_s30   ;;  %s1166_s29 = sphi %s1229_s29, %s1451_s29   ;;  %s1162_s28 = sphi %s1227_s28, %s1450_s28   ;;  %s1158_s27 = sphi %s1225_s27, %s1449_s27  }
   0x6   : > { %s1250_s11 = sadd.s32 1, %s1170_s30   ;;  %s31_s12 = sadd.s32 1, %s1166_s29 }
   0x7   : > { %s28_s13 = ssub.s32 %s1170_s30, %s1250_s11  ;;  %p38_p0 = scmp.ne.s32.totalorder %s1166_s29, %s1162_s28 }
   0x8   : > { %p29_p1 = scmp.eq.s32.totalorder %s28_s13, 0  ;;  %p39_p2 = scmp.eq.s32.totalorder %s1170_s30, 0 }
   0x9   : > { %p44_p3 = scmp.ne.s32.totalorder %s1162_s28, %s1158_s27  ;;  %p45_p4 = scmp.eq.s32.totalorder %s1246_s9, 0 }
   0xa   : > { %s1262_s14 = scalar_select %p29_p1, %s1166_s29, %s31_s12  }
   0xb   : > { %p1264_p5 = por %p39_p2, %p38_p0  ;;  %p1268_p6 = por %p45_p4, %p44_p3 }
   0xc   : > { %1436 = sst [smem:[#allocation8_spill]] %s1262_s14  ;;  %p220_p7 = scmp.eq.s32.totalorder %s1246_s9, 1 }
   0xd   : > { %s1438_s16 = scalar_select %p1268_p6, 1, 0 }
   0xe   : > { %p226_p8 = scmp.eq.s32.totalorder %s948_s10, 1  ;;  %p1036_p10 = scmp.lt.s32.totalorder %s1170_s30, 2 }
   0xf   : > { %p1275_p11 = por %p220_p7, %p38_p0  ;;  %s264_s19 = sand.u32 1, %s1166_s29  }
  0x10   : > { %p1279_p12 = por %p226_p8, %p44_p3  ;;  %s952_s20 = sshll.u32 %s1170_s30, 7 }
  0x11   : > { %s1439_s17 = scalar_select %p1275_p11, 1, 0 }
  0x12   : > { %s1440_s18 = scalar_select %p1279_p12, 1, 0 }
  0x13   : > { %s951_s21 = sshll.u32 %s264_s19, 3  ;;  %s1288_s24 = scalar_lea.hbm %s1425_s0, %s952_s20 }
  0x14   : > { %s268_s25 = scalar_lea.vmem [#allocation2], %s951_s21  ;;  %p1292_p13 = pnand %p1036_p10, %p1264_p5 }
  0x15   : > { %s275_s26 = sshll.u32 %s268_s25, 4  ;;  %s265_s12 = scalar_lea.sflag [#allocation3], %s264_s19  ;;  %s1296_s26 = int_to_ptr.vmem [resolvable:$true] %s275_s26 }
  0x16   : > { %s1078_s13 = scalar_lea.hbm %s1288_s24, 128  ;;  %p1080_p3 = pneg %p1292_p13 }
  0x17   : > { %p1079_p2 = scmp.ne.s32.totalorder %s1288_s24, %s1078_s13  ;;  %s1083_s15 = scalar_lea.hbm %s1425_s0, 256 }
  0x18   : > { %p1084_p5 = scmp.lt.s32.totalorder %s1288_s24, %s1425_s0  ;;  %p1085_p8 = scmp.lt.s32.totalorder %s1083_s15, %s1078_s13 }
  0x19   : > { %p1081_p4 = pnand %p1080_p3, %p1079_p2 }
  0x1a   : > { %p1086_p10 = por %p1085_p8, %p1084_p5 }
  0x1b   : > { %p1082_p7 = pneg %p1081_p4 }
  0x1d   : > { %p1087_p9 = pnand %p1086_p10, %p1082_p7 }
  0x1f   : > { %1090 = shalt.err (!%p1087_p9)
}
  0x20   : > { %s1091_s19 = scalar_lea.vmem %s1296_s26, 128  ;;  %s1172_s25 = smov [#allocation2]  }
  0x21   : > { %p1092_p0 = scmp.ne.s32.totalorder %s1296_s26, %s1091_s19  ;;  %s1096_s14 = sshll.u32 %s1172_s25, 4  ;;  %s1097_s14 = int_to_ptr.vmem [resolvable:$false] %s1096_s14 }
  0x22   : > { %s1098_s20 = scalar_lea.vmem %s1097_s14, 256  ;;  %p1099_p4 = scmp.lt.s32.totalorder %s1296_s26, %s1097_s14 }
  0x23   : > { %p1094_p1 = pnand %p1092_p0, %p1080_p3  ;;  %p1100_p12 = scmp.lt.s32.totalorder %s1098_s20, %s1091_s19 }
  0x25   : > { %p1095_p2 = pneg %p1094_p1  ;;  %p1101_p11 = por %p1100_p12, %p1099_p4 }
  0x27   : > { %p1102_p6 = pnand %p1101_p11, %p1095_p2 }
  0x29   : > { %1105 = shalt.err (!%p1102_p6)
}
  0x2a   : > { %1031 = dma.hbm_to_vmem [thread:$0]  (!%p1292_p13), %s1288_s24, 128, %s1296_s26, %s265_s12  }
  0x2b   : > { %p1442_p9 = scmp.lt.s32.totalorder %s1170_s30, 3  ;;  %p1443_p7 = scmp.ge.s32.totalorder %s1170_s30, 1 }
  0x2d   : > { %p288_p0 = pnand %p1443_p7, %p1442_p9 }
  0x2e   : > { %s1323_s13 = sand.u32 (!%p288_p0), 1, %s1162_s28   ;;  %p1444_p6 = scmp.ne.s32.totalorder (!%p288_p0), %s1438_s16, 0 }
  0x2f   : > { %291 = sbr.rel (%p288_p0) target bundleno = 1097 (0x449), region = 52  ;;  %s954_s14 = sshll.u32 (!%p288_p0), %s1323_s13, 3 }
  0x30   : > { %s294_s21 = scalar_lea.sflag (!%p288_p0), [#allocation3], %s1323_s13  ;;  %s297_s15 = scalar_lea.vmem (!%p288_p0), [#allocation2], %s954_s14 }
  0x34   : > { %1149 = dma.done.wait (%p1444_p6), %s294_s21, 128  }
  0x35   : > { %1151 = vsyncadd (%p1444_p6), %s294_s21, 4294967168  ;;  %v490_v0 = vlaneseq  ;;  %v1173_v1 = vmov 0.0   ;;  %vm1174_vm0 = vmmov 0   ;;  %vm341_vm1 = vcmask 64512   ;;  %v338_v6 = vld [vmem:[%s297_s15] sm:$0xff]  ;;  %p334_p11 = scmp.lt.s32.totalorder %s1246_s9, 1 }
  0x36   : > { %988 = vmatprep.subr.mxu0 %v1173_v1  ;;  %993 = vmatprep.subr.mxu1 %v1173_v1  ;;  %v340_v7 = vld [vmem:[%s1427_s2] sm:$0xf]  ;;  %v958_v8 = vld [vmem:[%s1427_s2 + $0x4] sm:$0xf]  ;;  %v1175_v9 = vmov 1.0   ;;  %v1176_v11 = vmov 0  }
  0x37   : > { %990 = vmatprep.mubr.msk.f32.mxu0 %vm1174_vm0, %v1173_v1  ;;  %995 = vmatprep.mubr.msk.f32.mxu1 %vm1174_vm0, %v1173_v1  ;;  %v491_v2 = vshrl.u32 %v490_v0, 7  ;;  %v493_v3 = vand.u32 127, %v490_v0  ;;  %v648_v10 = vld [vmem:[%s1428_s3] sm:$0xf]  ;;  %s335_s23 = scalar_select %p334_p11, %s1246_s9, 1  ;;  %vm658_vm4 = vcmask 1043456  }
  0x38   : > { %989 = vmatpush3.msra.mxu0 %v338_v6  ;;  %994 = vmatpush3.msra.mxu1 %v338_v6  ;;  %s1177_s21 = smov 1   ;;  %s1178_s15 = smov 127   ;;  %v672_v26 = vld [vmem:[%s1430_s5] sm:$0xf]  ;;  %vm670_vm5 = vcmask 121856   ;;  %vm668_vm6 = vcmask 7168  }
  0x39   : > { %v494_v4 = vmul.u32 2, %v491_v2  ;;  %991 = vmatmul.mubr.msk.f32.vlgmr.msra.gmra.mxu0 %vm341_vm1, %v340_v7  ;;  %996 = vmatmul.mubr.msk.f32.vlgmr.msra.gmra.mxu1 %vm341_vm1, %v958_v8  ;;  %s956_s19 = sshll.u32 %s335_s23, 2  ;;  %v660_v30 = vld [vmem:[%s1429_s4] sm:$0xf]  ;;  %vm678_vm7 = vcmask 195584   ;;  %vm772_vm8 = vcmask 97280  }
  0x3a   : > { %998 = vmatprep.subr.mxu0 %v1173_v1  ;;  %1003 = vmatprep.subr.mxu1 %v1173_v1  ;;  %s337_s14 = scalar_lea.vmem %s1426_s1, %s956_s19  ;;  %v766_v37 = vld [vmem:[%s1432_s7] sm:$0xf]  ;;  %s955_s25 = sshll.u32 %s1323_s13, 2  ;;  %vm850_vm9 = vcmask 125952  }
  0x3b   : > { %v498_v5 = vadd.s32 1, %v494_v4  ;;  %vm495_vm3 = vcmp.eq.s32.totalorder %v493_v3, %v494_v4  ;;  %1000 = vmatprep.mubr.msk.f32.mxu0 %vm1174_vm0, %v1173_v1  ;;  %1005 = vmatprep.mubr.msk.f32.mxu1 %vm1174_vm0, %v1173_v1  ;;  %v339_v23 = vld [vmem:[%s337_s14] sm:$0xf]  ;;  %s970_s20 = sshll.u32 %s1246_s9, 6  ;;  %s333_s14 = scalar_lea.vmem [#allocation5], %s955_s25 }
  0x3c   : > { %1004 = vmatpush3.msk.msra.mxu1 %vm495_vm3, %v1175_v9  ;;  %1076 = vset.pattern.permute.xlu0 %v1176_v11  ;;  %v753_v44 = vld [vmem:[%s1431_s6] sm:$0xf]  ;;  %s864_s24 = scalar_lea.hbm %s1433_s8, %s970_s20  ;;  %s853_s26 = scalar_lea.sflag [#allocation4], %s1323_s13 }
  0x3d   : > { %vm499_vm2 = vcmp.eq.s32.totalorder %v493_v3, %v498_v5  ;;  %1017 = vmatprep.subr.mxu1 %v1173_v1  ;;  %1077 = vset.pattern.permute.xlu1 %v1176_v11  ;;  %p1445_p13 = scmp.ne.s32.totalorder %s1439_s17, 0  ;;  %s1179_s12 = smov [#allocation5]  }
  0x3e   : > { %999 = vmatpush3.msk.msra.mxu0 %vm499_vm2, %v1175_v9  ;;  %651 = vperm.xlu0 %1076, %v648_v10   ;;  %s1110_s9 = sshll.u32 %s1179_s12, 4  ;;  %s1111_s9 = int_to_ptr.vmem [resolvable:$false] %s1110_s9 }
  0x3f   : > { %1008 = vmatprep.subr.mxu0 %v1173_v1  ;;  %s1112_s22 = scalar_lea.vmem %s1111_s9, 128 }
  0xb9   : > { %v652_v16 = vpop.permute.xlu0 %651 }
  0xf9   : > { %v411_v12 = vpop.f32.mrf.mxu0  ;;  %v486_v13 = vpop.f32.mrf.mxu1 }
  0xfa   : > { %1001 = vmatmul.mubr.msk.f32.vlgmr.msra.gmra.mxu0 %vm341_vm1, %v486_v13  ;;  %1006 = vmatmul.mubr.msk.f32.vlgmr.msra.gmra.mxu1 %vm341_vm1, %v411_v12 }
  0xfb   : > { %v992_v14 = vpop.f32.mrf.mxu0  ;;  %v997_v15 = vpop.f32.mrf.mxu1  ;;  %1014 = vmatprep.mubr.msk.f32.mxu0 %vm1174_vm0, %v1173_v1  ;;  %1021 = vmatprep.mubr.msk.f32.mxu1 %vm1174_vm0, %v1173_v1 }
 0x1ba   : > { %v571_v17 = vpop.f32.mrf.mxu0  ;;  %v644_v18 = vpop.f32.mrf.mxu1 }
 0x1bb   : > { %v645_v19 = vadd.f32 %v644_v18, %v571_v17 }
 0x1bc   : > { %v1002_v20 = vpop.f32.mrf.mxu0  ;;  %v1007_v21 = vpop.f32.mrf.mxu1 }
 0x1bd   : > { %v654_v22 = vadd.f32 %v652_v16, %v645_v19 }
 0x1bf   : > { %v656_v24 = vrot.slane %v654_v22, 4 }
 0x1c1   : > { %v659_v25 = vsel %vm658_vm4, %v339_v23, %v656_v24 }
 0x1c2   : > { %665 = vrot.lane.b32.xlu1 %v659_v25, %s1177_s21  ;;  %662 = vrot.lane.b32.xlu0 %v659_v25, %s1178_s15 }
 0x1c6   : > { %675 = vperm.xlu1 %1077, %v672_v26  }
 0x234   : > { %v666_v27 = vpop.permute.xlu1 %665  ;;  %v663_v28 = vpop.permute.xlu0 %662 }
 0x235   : > { %v671_v29 = vsel %vm670_vm5, %v663_v28, %v666_v27  ;;  %v669_v31 = vsel %vm668_vm6, %v663_v28, %v666_v27 }
 0x236   : > { %1009 = vmatpush3.msra.mxu0 %v671_v29 }
 0x237   : > { %1010 = vmatprep.subr.mxu0 %v1173_v1 }
 0x238   : > { %1011 = vmatpush3.msra.mxu0 %v659_v25 }
 0x239   : > { %1012 = vmatprep.subr.mxu0 %v1173_v1 }
 0x23a   : > { %1013 = vmatpush3.msra.mxu0 %v669_v31 }
 0x23b   : > { %1015 = vmatmul.mubr.msk.f32.vlgmr.msra.gmra.mxu0 %vm678_vm7, %v660_v30 }
 0x241   : > { %v676_v32 = vpop.permute.xlu1 %675 }
 0x2fb   : > { %v748_v33 = vpop.f32.mrf.mxu0 }
 0x2fc   : > { %v749_v34 = vadd.f32 %v748_v33, %v676_v32 }
 0x2fd   : > { %v1016_v35 = vpop.f32.mrf.mxu0 }
 0x2fe   : > { %v752_v36 = vmax.f32 %v749_v34, 0.0 }
 0x300   : > { %758 = vrot.lane.b32.xlu1 %v752_v36, %s1177_s21  ;;  %755 = vrot.lane.b32.xlu0 %v752_v36, %s1178_s15  ;;  %v763_v38 = vrot.slane %v752_v36, 4  ;;  %s866_s21 = sshll.u32 %s333_s14, 4  ;;  %s867_s21 = int_to_ptr.vmem [resolvable:$true] %s866_s21 }
 0x301   : > { %s1106_s10 = scalar_lea.vmem %s867_s21, 64  ;;  %p1113_p5 = scmp.lt.s32.totalorder %s867_s21, %s1111_s9 }
 0x302   : > { %p1107_p12 = scmp.ne.s32.totalorder %s867_s21, %s1106_s10  ;;  %p1114_p8 = scmp.lt.s32.totalorder %s1112_s22, %s1106_s10 }
 0x304   : > { %769 = vperm.xlu0 %1076, %v766_v37   ;;  %p1108_p1 = pnand %p1107_p12, %p1445_p13  ;;  %p1115_p10 = por %p1114_p8, %p1113_p5 }
 0x306   : > { %p1109_p3 = pneg %p1108_p1 }
 0x308   : > { %p1116_p2 = pnand %p1115_p10, %p1109_p3 }
 0x372   : > { %v759_v39 = vpop.permute.xlu1 %758  ;;  %v756_v40 = vpop.permute.xlu0 %755 }
 0x373   : > { %v761_v41 = vsel %vm668_vm6, %v756_v40, %v759_v39  ;;  %v762_v42 = vsel %vm670_vm5, %v756_v40, %v759_v39 }
 0x374   : > { %1018 = vmatpush3.msk.msra.mxu1 %vm658_vm4, %v762_v42  ;;  %v765_v43 = vsel %vm658_vm4, %v761_v41, %v763_v38 }
 0x375   : > { %1019 = vmatprep.subr.mxu1 %v1173_v1 }
 0x376   : > { %1020 = vmatpush3.msra.mxu1 %v765_v43 }
 0x377   : > { %1022 = vmatmul.mubr.msk.f32.vlgmr.msra.gmra.mxu1 %vm772_vm8, %v753_v44 }
 0x37f   : > { %v770_v45 = vpop.permute.xlu0 %769 }
 0x437   : > { %v845_v46 = vpop.f32.mrf.mxu1 }
 0x438   : > { %v846_v47 = vadd.f32 %v845_v46, %v770_v45 }
 0x439   : > { %v1023_v48 = vpop.f32.mrf.mxu1 }
 0x43a   : > { %v849_v49 = vmax.f32 %v846_v47, 0.0 }
 0x43c   : > { %851 = vst.msk [vmem:[%s333_s14] sm:$0xf] %vm850_vm9, %v849_v49 }
 0x43d   : > { %1119 = shalt.err (!%p1116_p2)
}
 0x43e   : > { %s1120_s23 = scalar_lea.hbm %s864_s24, 64  ;;  %s1124_s25 = scalar_lea.hbm %s1433_s8, 128 }
 0x43f   : > { %p1121_p4 = scmp.ne.s32.totalorder %s864_s24, %s1120_s23  ;;  %p1125_p0 = scmp.lt.s32.totalorder %s864_s24, %s1433_s8 }
 0x440   : > { %p1126_p6 = scmp.lt.s32.totalorder %s1124_s25, %s1120_s23 }
 0x441   : > { %p1122_p9 = pnand %p1121_p4, %p1445_p13 }
 0x442   : > { %p1127_p11 = por %p1126_p6, %p1125_p0 }
 0x443   : > { %p1123_p7 = pneg %p1122_p9 }
 0x445   : > { %p1128_p12 = pnand %p1127_p11, %p1123_p7 }
 0x447   : > { %1131 = shalt.err (!%p1128_p12)
}
 0x448   : > { %1026 = dma.vmem_to_hbm [thread:$0]  (%p1445_p13), %s867_s21, 64, %s864_s24, %s853_s26  }
 0x449 PF: > { %s878_s15 = sand.u32 1, %s1158_s27   ;;  %p1446_p1 = scmp.ne.s32.totalorder %s1440_s18, 0 }
 0x44a   : > { %p1447_p3 = scmp.ge.s32.totalorder %s1170_s30, 2  ;;  %s879_s16 = scalar_lea.sflag [#allocation4], %s878_s15 }
 0x44c   : > { %p1033_p5 = pnand %p1447_p3, %p1446_p1 }
 0x44e   : > { %p1034_p8 = pneg %p1033_p5 }
 0x450   : > { %1153 = dma.done.wait (%p1034_p8), %s879_s16, 64  }
 0x451   : > { %1155 = vsyncadd (%p1034_p8), %s879_s16, 4294967232  ;;  %s1448_s10 = sld [smem:[#allocation8_spill]]  ;;  %p21_p10 = scmp.ge.s32.totalorder %s1250_s11, 4  }
 0x452   : > { %s1449_s27 = smov %s1162_s28  ;;  %s1450_s28 = smov %s1166_s29 }
 0x453   : > { %s1452_s30 = smov %s1250_s11  ;;  %23 = sbr.rel (!%p21_p10) target bundleno = 5 (0x5), region = 101 }
 0x457   : > { %s1451_s29 = smov %s1448_s10 }
 0x458   :  { %884 = vsyncpa [#allocation3], 1 }
 0x459   :  { %886 = vsyncpa [#allocation3 + $0x1], 1 }
 0x45a   :  { %887 = vsyncpa [#allocation4], 1 }
 0x45b   :  { %889 = vsyncpa [#allocation4 + $0x1], 1 }

</bundles_post_ra>
